<compile_context>
chip_gen: v6e
topology: v6e:2x2x1
jax: 0.10.0
libtpu: 0.0.40
codegen_flags: <defaults>
</compile_context>

<pallas_src>
import jax
import jax.numpy as jnp
from jax.experimental import pallas as pl
from jax.experimental.pallas import tpu as pltpu


# ---------------------------------------------------------------------------
# Fused per-level kernel (one row strip of one batch element per grid step)
# ---------------------------------------------------------------------------
def _make_level_kernel(has_hi: bool):
    def kernel(*refs):
        if has_hi:
            (x_c, x_t, x_b, hi_c, hi_t, hi_b,
             wlat_ref, woutk_ref, lat_ref, out_ref, pad_ref) = refs
        else:
            (x_c, x_t, x_b,
             wlat_ref, woutk_ref, lat_ref, out_ref, pad_ref) = refs

        s = pl.program_id(1)
        ns = pl.num_programs(1)
        _, TH, W, C = lat_ref.shape
        Cin = x_c.shape[-1]
        f32 = jnp.float32

        wl = wlat_ref[...]                                        # (Cin, C) bf16

        # ---- 1x1 quaternion lateral conv: one MXU matmul per strip ----------
        xc = x_c[0].reshape(TH * W, Cin)                          # bf16
        lat = jnp.dot(xc, wl, preferred_element_type=f32)         # (TH*W, C) f32
        lat = lat.reshape(TH, W, C)
        # halo rows (row above / below the strip), recomputed from x (1 row each)
        lat_t = jnp.dot(x_t[0, 0], wl, preferred_element_type=f32)   # (W, C)
        lat_b = jnp.dot(x_b[0, 0], wl, preferred_element_type=f32)   # (W, C)

        # ---- fused nearest-2x upsample + add of the coarser lateral ---------
        if has_hi:
            THs, Ws = TH // 2, W // 2
            hi = hi_c[0].astype(f32)                              # (THs, Ws, C)
            # W-upsample of the (half-res) hi; H-upsample folded into the add
            # (no materialized full-resolution f32 `up` buffer).
            hi_w = jnp.broadcast_to(hi[:, :, None, :],
                                    (THs, Ws, 2, C)).reshape(THs, W, C)
            lat = (lat.reshape(THs, 2, W, C) + hi_w[:, None, :, :]).reshape(TH, W, C)
            hi_tw = jnp.broadcast_to(hi_t[0, 0].astype(f32)[:, None, :],
                                     (Ws, 2, C)).reshape(W, C)
            hi_bw = jnp.broadcast_to(hi_b[0, 0].astype(f32)[:, None, :],
                                     (Ws, 2, C)).reshape(W, C)
            lat_t = lat_t + hi_tw
            lat_b = lat_b + hi_bw

        lat_bf = lat.astype(jnp.bfloat16)
        lat_ref[0] = lat_bf                                       # next level's hi

        # ---- halo-padded strip in VMEM: border-only zeroing every step ------
        zcol = jnp.zeros((TH + 2, 1, C), jnp.bfloat16)
        pad_ref[pl.ds(0, TH + 2), pl.ds(0, 1), :] = zcol          # left border col
        pad_ref[pl.ds(0, TH + 2), pl.ds(W + 1, 1), :] = zcol      # right border col
        top = jnp.where(s == 0, 0.0, lat_t).astype(jnp.bfloat16)      # image top pad
        bot = jnp.where(s == ns - 1, 0.0, lat_b).astype(jnp.bfloat16)  # image bottom pad
        pad_ref[pl.ds(0, 1), pl.ds(1, W), :] = top[None]
        pad_ref[pl.ds(TH + 1, 1), pl.ds(1, W), :] = bot[None]
        pad_ref[pl.ds(1, TH), pl.ds(1, W), :] = lat_bf            # interior

        # ---- 3x3 quaternion output conv: 3 accumulating matmuls (K = 3C) ----
        # natural (M,K) x (K,N) orientation; weights pre-arranged as (3, 3C, C)
        acc = jnp.zeros((TH * W, C), f32)
        for ky in range(3):                      # static unroll
            cols = jnp.concatenate(
                [pad_ref[pl.ds(ky, TH), pl.ds(kx, W), :] for kx in range(3)],
                axis=-1).reshape(TH * W, 3 * C)                   # (M, 3C) bf16
            acc = acc + jnp.dot(cols, woutk_ref[ky],
                                preferred_element_type=f32)
        out_ref[0] = acc.reshape(TH, W, C).astype(out_ref.dtype)  # bf16 writeback

    return kernel


# ---------------------------------------------------------------------------
# Row-strip height chooser (VMEM budget sized for v7x's 64 MiB VMEM)
# ---------------------------------------------------------------------------
def _pick_tile_rows(H, W, Cin, C, has_hi, max_tile_rows=None,
                    budget_bytes=20 * 1024 * 1024):
    """Largest TH dividing H (even when an upsampled lateral is added) whose
    per-step footprint (double-buffered blocks + pad scratch + matmul temps)
    stays under the budget."""
    def footprint(th):
        blk_x = (th + 2) * W * Cin * 2
        blk_hi = ((th // 2 + 2) * (W // 2) * C * 2) if has_hi else 0
        blk_out = 2 * th * W * C * 2                       # lat + out, bf16
        pad = (th + 2) * (W + 2) * C * 2
        temps = th * W * C * 4 + th * W * 3 * C * 2 + th * W * C * 4
        return 2 * (blk_x + blk_hi + blk_out) + pad + temps

    cands = [t for t in range(H, 0, -1)
             if H % t == 0 and (not has_hi or t % 2 == 0)]
    ok = [t for t in cands
          if footprint(t) <= budget_bytes
          and (max_tile_rows is None or t <= max_tile_rows)]
    return ok[0] if ok else cands[-1]


# ---------------------------------------------------------------------------
# Wrapper around pallas_call (one fused call per pyramid level)
# ---------------------------------------------------------------------------
def _fpn_level(x, w_lat_ic, w_out_k, hi=None, *, max_tile_rows=None):
    """x: (N,H,W,Cin) bf16; w_lat_ic: (Cin,C) bf16; w_out_k: (3,3C,C) bf16;
    hi: (N,Hs,Ws,C) bf16 accumulated lateral of the coarser level, or None.
    Returns (lat (N,H,W,C) bf16, out (N,H,W,C) bf16)."""
    N, H, W, Cin = x.shape
    C = w_lat_ic.shape[1]
    has_hi = hi is not None
    TH = _pick_tile_rows(H, W, Cin, C, has_hi, max_tile_rows)
    n_strips = H // TH

    idx_c = lambda n, s: (n, s, 0, 0)
    idx_xt = lambda n, s: (n, jnp.maximum(s * TH - 1, 0), 0, 0)       # top halo row
    idx_xb = lambda n, s: (n, jnp.minimum(s * TH + TH, H - 1), 0, 0)  # bottom halo row

    in_specs = [pl.BlockSpec((1, TH, W, Cin), idx_c),
                pl.BlockSpec((1, 1, W, Cin), idx_xt),
                pl.BlockSpec((1, 1, W, Cin), idx_xb)]
    operands = [x, x, x]

    if has_hi:
        Hs, Ws = hi.shape[1], hi.shape[2]
        assert H == 2 * Hs and W == 2 * Ws, "levels must form an exact 2x pyramid"
        THs = TH // 2
        idx_hc = lambda n, s: (n, s, 0, 0)
        idx_ht = lambda n, s: (n, jnp.maximum(s * THs - 1, 0), 0, 0)
        idx_hb = lambda n, s: (n, jnp.minimum(s * THs + THs, Hs - 1), 0, 0)
        in_specs += [pl.BlockSpec((1, THs, Ws, C), idx_hc),
                     pl.BlockSpec((1, 1, Ws, C), idx_ht),
                     pl.BlockSpec((1, 1, Ws, C), idx_hb)]
        operands += [hi, hi, hi]

    in_specs += [pl.BlockSpec((Cin, C), lambda n, s: (0, 0)),
                 pl.BlockSpec((3, 3 * C, C), lambda n, s: (0, 0, 0))]
    operands += [w_lat_ic, w_out_k]

    out_specs = [pl.BlockSpec((1, TH, W, C), idx_c),   # lat (next level's hi)
                 pl.BlockSpec((1, TH, W, C), idx_c)]   # out (FPN output)
    out_shape = [jax.ShapeDtypeStruct((N, H, W, C), jnp.bfloat16),
                 jax.ShapeDtypeStruct((N, H, W, C), jnp.bfloat16)]

    flops = int(2 * N * H * W * C * (Cin + 9 * C))
    bytes_acc = int(x.size * x.dtype.itemsize
                    + (hi.size * hi.dtype.itemsize if has_hi else 0)
                    + w_lat_ic.size * 2 + w_out_k.size * 2
                    + 2 * N * H * W * C * 2)

    lat, out = pl.pallas_call(
        _make_level_kernel(has_hi),
        grid=(N, n_strips),
        in_specs=in_specs,
        out_specs=out_specs,
        out_shape=out_shape,
        scratch_shapes=[pltpu.VMEM((TH + 2, W + 2, C), jnp.bfloat16)],
        compiler_params=pltpu.CompilerParams(
            dimension_semantics=("parallel", "parallel"),   # batch AND strips
            vmem_limit_bytes=48 * 1024 * 1024),
        cost_estimate=pl.CostEstimate(flops=flops, transcendentals=0,
                                      bytes_accessed=bytes_acc),
    )(*operands)
    return lat, out


# ---------------------------------------------------------------------------
# Quaternion weight construction (parameter setup glue, plain JAX)
# ---------------------------------------------------------------------------
def quaternion_weight_oihw(key, in_ch, out_ch, ksize):
    """Dense OIHW weight of a QConv2D built from 4 quaternion components."""
    assert in_ch % 4 == 0 and out_ch % 4 == 0, "channels must be multiples of 4"
    co4, ci4 = out_ch // 4, in_ch // 4
    kr, ki, kj, kk = jax.random.split(key, 4)
    scale = 1.0 / (in_ch * ksize * ksize) ** 0.5
    r = scale * jax.random.normal(kr, (co4, ci4, ksize, ksize), jnp.float32)
    i = scale * jax.random.normal(ki, (co4, ci4, ksize, ksize), jnp.float32)
    j = scale * jax.random.normal(kj, (co4, ci4, ksize, ksize), jnp.float32)
    k = scale * jax.random.normal(kk, (co4, ci4, ksize, ksize), jnp.float32)
    # Hamilton product block matrix (rows = output component, cols = input comp.)
    row_r = jnp.concatenate([r, -i, -j, -k], axis=1)
    row_i = jnp.concatenate([i,  r, -k,  j], axis=1)
    row_j = jnp.concatenate([j,  k,  r, -i], axis=1)
    row_k = jnp.concatenate([k, -j,  i,  r], axis=1)
    return jnp.concatenate([row_r, row_i, row_j, row_k], axis=0)   # (O, I, kh, kw)


# ---------------------------------------------------------------------------
# QuaternionFPN forward (Pallas)
# ---------------------------------------------------------------------------
def quaternion_fpn_forward(inputs_nhwc, lateral_ws_oihw, output_ws_oihw, *,
                           max_tile_rows=None):
    """inputs_nhwc: list of (N,H,W,Cin) features (finest -> coarsest).
    Weights in dense OIHW. Returns NHWC bf16 outputs (channels-last)."""
    n = len(inputs_nhwc)
    C = output_ws_oihw[0].shape[0]

    xs = [x if x.dtype == jnp.bfloat16 else x.astype(jnp.bfloat16)
          for x in inputs_nhwc]
    # 1x1 lateral weights -> (Cin, C); 3x3 output weights -> (3, 3C, C): one
    # (K=3C, N=C) right-hand matmul operand per kernel row ky, so the im2col
    # strip stays the (M, K) LHS and nothing large is transposed.
    w_lat = [w[:, :, 0, 0].T.astype(jnp.bfloat16) for w in lateral_ws_oihw]
    w_out = [jnp.transpose(w, (2, 3, 1, 0)).reshape(3, 3 * C, C).astype(jnp.bfloat16)
             for w in output_ws_oihw]

    # TODO(synk): fuse the coarsest (tiny-spatial) levels into a single
    # pallas_call that keeps the running lateral in VMEM; those calls are
    # launch-overhead bound. Per-level fusion is kept here for clarity.
    outs = [None] * n
    hi = None
    for i in range(n - 1, -1, -1):      # coarsest -> finest (top-down pathway)
        hi, outs[i] = _fpn_level(xs[i], w_lat[i], w_out[i], hi=hi,
                                 max_tile_rows=max_tile_rows)
    return outs


# ---------------------------------------------------------------------------
# Pure-JAX reference mirroring the kernel's bf16-input / f32-accumulate math
# ---------------------------------------------------------------------------
def quaternion_fpn_reference(inputs_nhwc, lateral_ws_oihw, output_ws_oihw):
    bq = lambda a: a.astype(jnp.bfloat16).astype(jnp.float32)

    def conv(x, w, pad):
        return jax.lax.conv_general_dilated(
            x, w, window_strides=(1, 1), padding=[(pad, pad), (pad, pad)],
            dimension_numbers=("NHWC", "OIHW", "NHWC"))

    n = len(inputs_nhwc)
    outs = [None] * n
    hi = None
    for i in range(n - 1, -1, -1):
        lat = conv(bq(inputs_nhwc[i]), bq(lateral_ws_oihw[i]), 0)
        if hi is not None:
            lat = lat + jnp.repeat(jnp.repeat(hi, 2, axis=1), 2, axis=2)
        lat = bq(lat)                     # kernel stores / consumes bf16 laterals
        outs[i] = conv(lat, bq(output_ws_oihw[i]), 1).astype(jnp.bfloat16)
        hi = lat
    return outs                            # NHWC bf16 (matches kernel layout)


# ---------------------------------------------------------------------------
if __name__ == "__main__":
    key = jax.random.PRNGKey(0)

    in_channels = [8, 16, 32]       # multiples of 4 (quaternion blocks)
    out_channels = 16               # multiple of 4
    batch = 2
    spatial = [16, 8, 4]            # each level exactly 2x coarser

    k_in, k_lat, k_out = jax.random.split(key, 3)

    # deterministic NHWC example inputs (bf16 activations)
    in_keys = jax.random.split(k_in, len(in_channels))
    inputs = [jax.random.normal(ik, (batch, s, s, c), jnp.float32).astype(jnp.bfloat16)
              for ik, c, s in zip(in_keys, in_channels, spatial)]

    # deterministic quaternion conv parameters (dense OIHW, f32 master copy)
    lat_keys = jax.random.split(k_lat, len(in_channels))
    out_keys = jax.random.split(k_out, len(in_channels))
    lateral_ws = [quaternion_weight_oihw(lk, c, out_channels, 1)
                  for lk, c in zip(lat_keys, in_channels)]
    output_ws = [quaternion_weight_oihw(ok, out_channels, out_channels, 3)
                 for ok in out_keys]

    # max_tile_rows=8 -> the 16x16 level runs with 2 row-strips per batch
    # element (exercises the halo path); smaller levels use a single strip.
    outs = quaternion_fpn_forward(inputs, lateral_ws, output_ws, max_tile_rows=8)
    outs = [jax.block_until_ready(o) for o in outs]

    refs = quaternion_fpn_reference(inputs, lateral_ws, output_ws)
    for o, r in zip(outs, refs):
        assert o.shape == r.shape and o.dtype == jnp.bfloat16
        assert jnp.allclose(o.astype(jnp.float32), r.astype(jnp.float32),
                            rtol=2e-2, atol=2e-2), "mismatch vs reference"

    print("KERNEL_OK")
</pallas_src>

<mosaic_0001>
module attributes {stable_mosaic.version = 11 : i64} {
  func.func @kernel(%arg0: i32, %arg1: i32, %arg2: memref<1x4x4x32xbf16, #tpu.memory_space<vmem>>, %arg3: memref<1x1x4x32xbf16, #tpu.memory_space<vmem>>, %arg4: memref<1x1x4x32xbf16, #tpu.memory_space<vmem>>, %arg5: memref<32x16xbf16, #tpu.memory_space<vmem>>, %arg6: memref<3x48x16xbf16, #tpu.memory_space<vmem>>, %arg7: memref<1x4x4x16xbf16, #tpu.memory_space<vmem>>, %arg8: memref<1x4x4x16xbf16, #tpu.memory_space<vmem>>, %arg9: memref<6x6x16xbf16, #tpu.memory_space<vmem>>) attributes {dimension_semantics = [#tpu.dimension_semantics<parallel>, #tpu.dimension_semantics<parallel>], iteration_bounds = array<i64: 2, 1>, scalar_prefetch = 0 : i64, scratch_operands = 1 : i64, tpu.core_type = #tpu.core_type<tc>, window_params = [{transform_indices = @transform_0, window_bounds = array<i64: 1, 4, 4, 32>}, {transform_indices = @transform_1, window_bounds = array<i64: 1, 1, 4, 32>}, {transform_indices = @transform_2, window_bounds = array<i64: 1, 1, 4, 32>}, {pipeline_mode = #tpu.pipeline_mode<synchronous>, transform_indices = @transform_3, window_bounds = array<i64: 32, 16>}, {pipeline_mode = #tpu.pipeline_mode<synchronous>, transform_indices = @transform_4, window_bounds = array<i64: 3, 48, 16>}, {transform_indices = @transform_5, window_bounds = array<i64: 1, 4, 4, 16>}, {transform_indices = @transform_6, window_bounds = array<i64: 1, 4, 4, 16>}]} {
    %c0 = arith.constant 0 : index
    %c0_0 = arith.constant 0 : index
    %0 = vector.load %arg5[%c0, %c0_0] : memref<32x16xbf16, #tpu.memory_space<vmem>>, vector<32x16xbf16>
    %c0_1 = arith.constant 0 : index
    %c0_2 = arith.constant 0 : index
    %c0_3 = arith.constant 0 : index
    %c0_4 = arith.constant 0 : index
    %1 = vector.load %arg2[%c0_1, %c0_2, %c0_3, %c0_4] : memref<1x4x4x32xbf16, #tpu.memory_space<vmem>>, vector<1x4x4x32xbf16>
    %2 = vector.shape_cast %1 : vector<1x4x4x32xbf16> to vector<4x4x32xbf16>
    %3 = vector.shape_cast %2 : vector<4x4x32xbf16> to vector<16x32xbf16>
    %cst = arith.constant dense<0.000000e+00> : vector<16x16xf32>
    %4 = tpu.matmul %3, %0, %cst {dimension_numbers = #tpu.dot_dimension_numbers<[1], [0], [0], [1], [0, 0, 1, 1], [], []>} : vector<16x32xbf16>, vector<32x16xbf16>, vector<16x16xf32> -> vector<16x16xf32>
    %5 = vector.shape_cast %4 : vector<16x16xf32> to vector<4x4x16xf32>
    %c0_5 = arith.constant 0 : index
    %c0_6 = arith.constant 0 : index
    %c0_7 = arith.constant 0 : index
    %c0_8 = arith.constant 0 : index
    %6 = vector.load %arg3[%c0_5, %c0_6, %c0_7, %c0_8] : memref<1x1x4x32xbf16, #tpu.memory_space<vmem>>, vector<1x1x4x32xbf16>
    %7 = vector.shape_cast %6 : vector<1x1x4x32xbf16> to vector<4x32xbf16>
    %cst_9 = arith.constant dense<0.000000e+00> : vector<4x16xf32>
    %8 = tpu.matmul %7, %0, %cst_9 {dimension_numbers = #tpu.dot_dimension_numbers<[1], [0], [0], [1], [0, 0, 1, 1], [], []>} : vector<4x32xbf16>, vector<32x16xbf16>, vector<4x16xf32> -> vector<4x16xf32>
    %c0_10 = arith.constant 0 : index
    %c0_11 = arith.constant 0 : index
    %c0_12 = arith.constant 0 : index
    %c0_13 = arith.constant 0 : index
    %9 = vector.load %arg4[%c0_10, %c0_11, %c0_12, %c0_13] : memref<1x1x4x32xbf16, #tpu.memory_space<vmem>>, vector<1x1x4x32xbf16>
    %10 = vector.shape_cast %9 : vector<1x1x4x32xbf16> to vector<4x32xbf16>
    %cst_14 = arith.constant dense<0.000000e+00> : vector<4x16xf32>
    %11 = tpu.matmul %10, %0, %cst_14 {dimension_numbers = #tpu.dot_dimension_numbers<[1], [0], [0], [1], [0, 0, 1, 1], [], []>} : vector<4x32xbf16>, vector<32x16xbf16>, vector<4x16xf32> -> vector<4x16xf32>
    %12 = arith.truncf %5 : vector<4x4x16xf32> to vector<4x4x16xbf16>
    %c0_15 = arith.constant 0 : index
    %c0_16 = arith.constant 0 : index
    %c0_17 = arith.constant 0 : index
    %c0_18 = arith.constant 0 : index
    %13 = vector.load %arg7[%c0_15, %c0_16, %c0_17, %c0_18] : memref<1x4x4x16xbf16, #tpu.memory_space<vmem>>, vector<1x4x4x16xbf16>
    %14 = vector.shape_cast %13 : vector<1x4x4x16xbf16> to vector<4x4x16xbf16>
    %15 = vector.shape_cast %12 : vector<4x4x16xbf16> to vector<1x4x4x16xbf16>
    tpu.vector_store %arg7[%c0_15, %c0_16, %c0_17, %c0_18], %15 {strides = array<i32>} : memref<1x4x4x16xbf16, #tpu.memory_space<vmem>>, vector<1x4x4x16xbf16>,
    %cst_19 = arith.constant 0.000000e+00 : bf16
    %16 = vector.broadcast %cst_19 : bf16 to vector<6x1x16xbf16>
    %c0_20 = arith.constant 0 : index
    %c0_21 = arith.constant 0 : index
    %c0_22 = arith.constant 0 : index
    %17 = vector.load %arg9[%c0_20, %c0_21, %c0_22] : memref<6x6x16xbf16, #tpu.memory_space<vmem>>, vector<6x1x16xbf16>
    tpu.vector_store %arg9[%c0_20, %c0_21, %c0_22], %16 {strides = array<i32>} : memref<6x6x16xbf16, #tpu.memory_space<vmem>>, vector<6x1x16xbf16>,
    %c0_23 = arith.constant 0 : index
    %c5 = arith.constant 5 : index
    %c0_24 = arith.constant 0 : index
    %18 = vector.load %arg9[%c0_23, %c5, %c0_24] : memref<6x6x16xbf16, #tpu.memory_space<vmem>>, vector<6x1x16xbf16>
    tpu.vector_store %arg9[%c0_23, %c5, %c0_24], %16 {strides = array<i32>} : memref<6x6x16xbf16, #tpu.memory_space<vmem>>, vector<6x1x16xbf16>,
    %c0_i32 = arith.constant 0 : i32
    %19 = arith.cmpi eq, %arg1, %c0_i32 : i32
    %cst_25 = arith.constant 0.000000e+00 : f32
    %20 = vector.broadcast %cst_25 : f32 to vector<4x16xf32>
    %21 = arith.select %19, %20, %8 : vector<4x16xf32>
    %22 = arith.truncf %21 : vector<4x16xf32> to vector<4x16xbf16>
    %c0_i32_26 = arith.constant 0 : i32
    %23 = arith.cmpi eq, %arg1, %c0_i32_26 : i32
    %cst_27 = arith.constant 0.000000e+00 : f32
    %24 = vector.broadcast %cst_27 : f32 to vector<4x16xf32>
    %25 = arith.select %23, %24, %11 : vector<4x16xf32>
    %26 = arith.truncf %25 : vector<4x16xf32> to vector<4x16xbf16>
    %27 = vector.shape_cast %22 : vector<4x16xbf16> to vector<1x4x16xbf16>
    %c0_28 = arith.constant 0 : index
    %c1 = arith.constant 1 : index
    %c0_29 = arith.constant 0 : index
    %28 = vector.load %arg9[%c0_28, %c1, %c0_29] : memref<6x6x16xbf16, #tpu.memory_space<vmem>>, vector<1x4x16xbf16>
    tpu.vector_store %arg9[%c0_28, %c1, %c0_29], %27 {strides = array<i32>} : memref<6x6x16xbf16, #tpu.memory_space<vmem>>, vector<1x4x16xbf16>,
    %29 = vector.shape_cast %26 : vector<4x16xbf16> to vector<1x4x16xbf16>
    %c5_30 = arith.constant 5 : index
    %c1_31 = arith.constant 1 : index
    %c0_32 = arith.constant 0 : index
    %30 = vector.load %arg9[%c5_30, %c1_31, %c0_32] : memref<6x6x16xbf16, #tpu.memory_space<vmem>>, vector<1x4x16xbf16>
    tpu.vector_store %arg9[%c5_30, %c1_31, %c0_32], %29 {strides = array<i32>} : memref<6x6x16xbf16, #tpu.memory_space<vmem>>, vector<1x4x16xbf16>,
    %c1_33 = arith.constant 1 : index
    %c1_34 = arith.constant 1 : index
    %c0_35 = arith.constant 0 : index
    %31 = vector.load %arg9[%c1_33, %c1_34, %c0_35] : memref<6x6x16xbf16, #tpu.memory_space<vmem>>, vector<4x4x16xbf16>
    tpu.vector_store %arg9[%c1_33, %c1_34, %c0_35], %12 {strides = array<i32>} : memref<6x6x16xbf16, #tpu.memory_space<vmem>>, vector<4x4x16xbf16>,
    %cst_36 = arith.constant 0.000000e+00 : f32
    %32 = vector.broadcast %cst_36 : f32 to vector<16x16xf32>
    %c0_37 = arith.constant 0 : index
    %c0_38 = arith.constant 0 : index
    %c0_39 = arith.constant 0 : index
    %33 = vector.load %arg9[%c0_37, %c0_38, %c0_39] : memref<6x6x16xbf16, #tpu.memory_space<vmem>>, vector<4x4x16xbf16>
    %c0_40 = arith.constant 0 : index
    %c1_41 = arith.constant 1 : index
    %c0_42 = arith.constant 0 : index
    %34 = vector.load %arg9[%c0_40, %c1_41, %c0_42] : memref<6x6x16xbf16, #tpu.memory_space<vmem>>, vector<4x4x16xbf16>
    %c0_43 = arith.constant 0 : index
    %c2 = arith.constant 2 : index
    %c0_44 = arith.constant 0 : index
    %35 = vector.load %arg9[%c0_43, %c2, %c0_44] : memref<6x6x16xbf16, #tpu.memory_space<vmem>>, vector<4x4x16xbf16>
    %36 = tpu.concatenate %33, %34, %35 in 2 : vector<4x4x16xbf16>, vector<4x4x16xbf16>, vector<4x4x16xbf16> -> vector<4x4x48xbf16>
    %37 = vector.shape_cast %36 : vector<4x4x48xbf16> to vector<16x48xbf16>
    %c0_45 = arith.constant 0 : index
    %c0_46 = arith.constant 0 : index
    %c0_47 = arith.constant 0 : index
    %38 = vector.load %arg6[%c0_45, %c0_46, %c0_47] : memref<3x48x16xbf16, #tpu.memory_space<vmem>>, vector<1x48x16xbf16>
    %39 = vector.shape_cast %38 : vector<1x48x16xbf16> to vector<48x16xbf16>
    %cst_48 = arith.constant dense<0.000000e+00> : vector<16x16xf32>
    %40 = tpu.matmul %37, %39, %cst_48 {dimension_numbers = #tpu.dot_dimension_numbers<[1], [0], [0], [1], [0, 0, 1, 1], [], []>} : vector<16x48xbf16>, vector<48x16xbf16>, vector<16x16xf32> -> vector<16x16xf32>
    %41 = arith.addf %32, %40 : vector<16x16xf32>
    %c1_49 = arith.constant 1 : index
    %c0_50 = arith.constant 0 : index
    %c0_51 = arith.constant 0 : index
    %42 = vector.load %arg9[%c1_49, %c0_50, %c0_51] : memref<6x6x16xbf16, #tpu.memory_space<vmem>>, vector<4x4x16xbf16>
    %c1_52 = arith.constant 1 : index
    %c1_53 = arith.constant 1 : index
    %c0_54 = arith.constant 0 : index
    %43 = vector.load %arg9[%c1_52, %c1_53, %c0_54] : memref<6x6x16xbf16, #tpu.memory_space<vmem>>, vector<4x4x16xbf16>
    %c1_55 = arith.constant 1 : index
    %c2_56 = arith.constant 2 : index
    %c0_57 = arith.constant 0 : index
    %44 = vector.load %arg9[%c1_55, %c2_56, %c0_57] : memref<6x6x16xbf16, #tpu.memory_space<vmem>>, vector<4x4x16xbf16>
    %45 = tpu.concatenate %42, %43, %44 in 2 : vector<4x4x16xbf16>, vector<4x4x16xbf16>, vector<4x4x16xbf16> -> vector<4x4x48xbf16>
    %46 = vector.shape_cast %45 : vector<4x4x48xbf16> to vector<16x48xbf16>
    %c1_58 = arith.constant 1 : index
    %c0_59 = arith.constant 0 : index
    %c0_60 = arith.constant 0 : index
    %47 = vector.load %arg6[%c1_58, %c0_59, %c0_60] : memref<3x48x16xbf16, #tpu.memory_space<vmem>>, vector<1x48x16xbf16>
    %48 = vector.shape_cast %47 : vector<1x48x16xbf16> to vector<48x16xbf16>
    %cst_61 = arith.constant dense<0.000000e+00> : vector<16x16xf32>
    %49 = tpu.matmul %46, %48, %cst_61 {dimension_numbers = #tpu.dot_dimension_numbers<[1], [0], [0], [1], [0, 0, 1, 1], [], []>} : vector<16x48xbf16>, vector<48x16xbf16>, vector<16x16xf32> -> vector<16x16xf32>
    %50 = arith.addf %41, %49 : vector<16x16xf32>
    %c2_62 = arith.constant 2 : index
    %c0_63 = arith.constant 0 : index
    %c0_64 = arith.constant 0 : index
    %51 = vector.load %arg9[%c2_62, %c0_63, %c0_64] : memref<6x6x16xbf16, #tpu.memory_space<vmem>>, vector<4x4x16xbf16>
    %c2_65 = arith.constant 2 : index
    %c1_66 = arith.constant 1 : index
    %c0_67 = arith.constant 0 : index
    %52 = vector.load %arg9[%c2_65, %c1_66, %c0_67] : memref<6x6x16xbf16, #tpu.memory_space<vmem>>, vector<4x4x16xbf16>
    %c2_68 = arith.constant 2 : index
    %c2_69 = arith.constant 2 : index
    %c0_70 = arith.constant 0 : index
    %53 = vector.load %arg9[%c2_68, %c2_69, %c0_70] : memref<6x6x16xbf16, #tpu.memory_space<vmem>>, vector<4x4x16xbf16>
    %54 = tpu.concatenate %51, %52, %53 in 2 : vector<4x4x16xbf16>, vector<4x4x16xbf16>, vector<4x4x16xbf16> -> vector<4x4x48xbf16>
    %55 = vector.shape_cast %54 : vector<4x4x48xbf16> to vector<16x48xbf16>
    %c2_71 = arith.constant 2 : index
    %c0_72 = arith.constant 0 : index
    %c0_73 = arith.constant 0 : index
    %56 = vector.load %arg6[%c2_71, %c0_72, %c0_73] : memref<3x48x16xbf16, #tpu.memory_space<vmem>>, vector<1x48x16xbf16>
    %57 = vector.shape_cast %56 : vector<1x48x16xbf16> to vector<48x16xbf16>
    %cst_74 = arith.constant dense<0.000000e+00> : vector<16x16xf32>
    %58 = tpu.matmul %55, %57, %cst_74 {dimension_numbers = #tpu.dot_dimension_numbers<[1], [0], [0], [1], [0, 0, 1, 1], [], []>} : vector<16x48xbf16>, vector<48x16xbf16>, vector<16x16xf32> -> vector<16x16xf32>
    %59 = arith.addf %50, %58 : vector<16x16xf32>
    %60 = vector.shape_cast %59 : vector<16x16xf32> to vector<4x4x16xf32>
    %61 = arith.truncf %60 : vector<4x4x16xf32> to vector<4x4x16xbf16>
    %c0_75 = arith.constant 0 : index
    %c0_76 = arith.constant 0 : index
    %c0_77 = arith.constant 0 : index
    %c0_78 = arith.constant 0 : index
    %62 = vector.load %arg8[%c0_75, %c0_76, %c0_77, %c0_78] : memref<1x4x4x16xbf16, #tpu.memory_space<vmem>>, vector<1x4x4x16xbf16>
    %63 = vector.shape_cast %62 : vector<1x4x4x16xbf16> to vector<4x4x16xbf16>
    %64 = vector.shape_cast %61 : vector<4x4x16xbf16> to vector<1x4x4x16xbf16>
    tpu.vector_store %arg8[%c0_75, %c0_76, %c0_77, %c0_78], %64 {strides = array<i32>} : memref<1x4x4x16xbf16, #tpu.memory_space<vmem>>, vector<1x4x4x16xbf16>,
    return
  }
  func.func @transform_0(%arg0: i32, %arg1: i32) -> (i32, i32, i32, i32) {
    %c0_i32 = arith.constant 0 : i32
    %c0_i32_0 = arith.constant 0 : i32
    %c0_i32_1 = arith.constant 0 : i32
    return %arg0, %arg1, %c0_i32, %c0_i32_0 : i32, i32, i32, i32
  }
  func.func @transform_1(%arg0: i32, %arg1: i32) -> (i32, i32, i32, i32) {
    %c4_i32 = arith.constant 4 : i32
    %0 = arith.muli %arg1, %c4_i32 : i32
    %c1_i32 = arith.constant 1 : i32
    %1 = arith.subi %0, %c1_i32 : i32
    %c0_i32 = arith.constant 0 : i32
    %2 = arith.maxsi %1, %c0_i32 : i32
    %c0_i32_0 = arith.constant 0 : i32
    %c0_i32_1 = arith.constant 0 : i32
    %c0_i32_2 = arith.constant 0 : i32
    return %arg0, %2, %c0_i32_0, %c0_i32_1 : i32, i32, i32, i32
  }
  func.func @transform_2(%arg0: i32, %arg1: i32) -> (i32, i32, i32, i32) {
    %c4_i32 = arith.constant 4 : i32
    %0 = arith.muli %arg1, %c4_i32 : i32
    %c4_i32_0 = arith.constant 4 : i32
    %1 = arith.addi %0, %c4_i32_0 : i32
    %c3_i32 = arith.constant 3 : i32
    %2 = arith.minsi %1, %c3_i32 : i32
    %c0_i32 = arith.constant 0 : i32
    %c0_i32_1 = arith.constant 0 : i32
    %c0_i32_2 = arith.constant 0 : i32
    return %arg0, %2, %c0_i32, %c0_i32_1 : i32, i32, i32, i32
  }
  func.func @transform_3(%arg0: i32, %arg1: i32) -> (i32, i32) {
    %c0_i32 = arith.constant 0 : i32
    %c0_i32_0 = arith.constant 0 : i32
    %c0_i32_1 = arith.constant 0 : i32
    return %c0_i32, %c0_i32_0 : i32, i32
  }
  func.func @transform_4(%arg0: i32, %arg1: i32) -> (i32, i32, i32) {
    %c0_i32 = arith.constant 0 : i32
    %c0_i32_0 = arith.constant 0 : i32
    %c0_i32_1 = arith.constant 0 : i32
    %c0_i32_2 = arith.constant 0 : i32
    return %c0_i32, %c0_i32_0, %c0_i32_1 : i32, i32, i32
  }
  func.func @transform_5(%arg0: i32, %arg1: i32) -> (i32, i32, i32, i32) {
    %c0_i32 = arith.constant 0 : i32
    %c0_i32_0 = arith.constant 0 : i32
    %c0_i32_1 = arith.constant 0 : i32
    return %arg0, %arg1, %c0_i32, %c0_i32_0 : i32, i32, i32, i32
  }
  func.func @transform_6(%arg0: i32, %arg1: i32) -> (i32, i32, i32, i32) {
    %c0_i32 = arith.constant 0 : i32
    %c0_i32_0 = arith.constant 0 : i32
    %c0_i32_1 = arith.constant 0 : i32
    return %arg0, %arg1, %c0_i32, %c0_i32_0 : i32, i32, i32, i32
  }
}

</mosaic_0001>

<bundles_post_ra>
// kernel: tpu_custom_call.1
= control target key start
LH: loop header
LB: loop body
LE: loop exit
PB: predicated region body
PF: predicated region fallthrough
CT: control target
= control target key end

     0   :  { %12 = vsyncpa [#allocation4], 0  ;;  %s2308_s0 = inlined_call_operand.vmem [shape: bf16[2,4,4,32], index: 0, kind: input, shape index: {}]   ;;  %s2309_s1 = inlined_call_operand.vmem [shape: bf16[2,4,4,32], index: 1, kind: input, shape index: {}]   ;;  %s2310_s2 = inlined_call_operand.vmem [shape: bf16[2,4,4,32], index: 2, kind: input, shape index: {}]   ;;  %s2311_s3 = inlined_call_operand.vmem [shape: bf16[32,16], index: 3, kind: input, shape index: {}]   ;;  %s2312_s4 = inlined_call_operand.vmem [shape: bf16[3,48,16], index: 4, kind: input, shape index: {}]   ;;  %s2313_s5 = inlined_call_operand.hbm [shape: bf16[2,4,4,16], index: 5, kind: output, shape index: {0}]   ;;  %s2314_s6 = inlined_call_operand.hbm [shape: bf16[2,4,4,16], index: 6, kind: output, shape index: {1}]  }
   0x1   :  { %14 = vsyncpa [#allocation4 + $0x1], 0 }
   0x2   :  { %15 = vsyncpa [#allocation6], 0 }
   0x3   :  { %17 = vsyncpa [#allocation6 + $0x1], 0  ;;  %s1951_s21 = smov 0   ;;  %s1953_s22 = smov 0  }
   0x4   :  { %s1955_s23 = smov 0   ;;  %s1957_s24 = smov 0  }
   0x5   :  { %s1959_s25 = smov 0   ;;  %s1961_s26 = smov 0  }
   0x6 LB: > { %s1531_s27 = sadd.s32 4294967295, %s1905_s26   ;;  %s1532_s28 = sadd.s32 4294967294, %s1905_s26   ;;  %s1905_s26 = sphi %s1961_s26, %s23_s26   ;;  %s1901_s25 = sphi %s1959_s25, %s2334_s25   ;;  %s1897_s24 = sphi %s1957_s24, %s2333_s24   ;;  %s1893_s23 = sphi %s1955_s23, %s2332_s23   ;;  %s1889_s22 = sphi %s1953_s22, %s2331_s22   ;;  %s1885_s21 = sphi %s1951_s21, %s2330_s21  }
   0x7   : > { %s35_s29 = sadd.s32 1, %s1901_s25  ;;  %s186_s30 = sadd.s32 1, %s1893_s23 }
   0x8   : > { %p37_p0 = scmp.ge.s32.totalorder %s35_s29, 2  ;;  %p196_p1 = scmp.ne.s32.totalorder %s1893_s23, %s1889_s22 }
   0x9   : > { %p197_p2 = scmp.eq.s32.totalorder %s1531_s27, 1  ;;  %p202_p3 = scmp.ne.s32.totalorder %s1889_s22, %s1885_s21 }
   0xa   : > { %s2336_s29 = smov (%p37_p0, %s35_s29), 0  ;;  %p203_p5 = scmp.eq.s32.totalorder %s1532_s28, 1 }
   0xb   : > { %p1991_p4 = por %p197_p2, %p196_p1  ;;  %s181_s8 = ssub.s32 %s1901_s25, %s2336_s29 }
   0xc   : > { %p1535_p6 = scmp.ge.s32.totalorder %s1905_s26, 1  ;;  %p184_p7 = scmp.eq.s32.totalorder %s181_s8, 0 }
   0xd   : > { %p1998_p8 = por %p203_p5, %p202_p3  ;;  %p306_p9 = scmp.lt.s32.totalorder %s1905_s26, 3 }
   0xe   : > { %s2004_s10 = scalar_select %p184_p7, %s1893_s23, %s186_s30  }
   0xf   : > { %p307_p10 = pnand %p1535_p6, %p306_p9 }
  0x10   : > { %p370_p11 = scmp.lt.s32.totalorder (!%p307_p10), %s1897_s24, 1  ;;  %s2316_s20 = smov (!%p307_p10), 32  }
  0x11   : > { %310 = sbr.rel (%p307_p10) target bundleno = 631 (0x277), region = 40  ;;  %s1912_s27 = smov (!%p307_p10), 16  }
  0x12   : > { %s2082_s28 = sand.u32 (!%p307_p10), 1, %s1889_s22   ;;  %s2327_s13 = smov (!%p307_p10), 32  }
  0x13   : > { %s2315_s30 = sshll.u32 (!%p307_p10), %s2082_s28, 3  ;;  %s1913_s12 = smov (!%p307_p10), [#allocation3]  }
  0x14   : > { %s2087_s8 = scalar_lea.vmem (!%p307_p10), [#allocation3], %s2315_s30 }
  0x16   : > { %v1764_v0 = vld [vmem:[%s2311_s3 + $0x8] sm:$0xff]   ;;  %v431_v1 = vlaneseq  ;;  %v1907_v2 = vmov 0.0   ;;  %v1765_v3 = vld [vmem:[%s2311_s3] sm:$0xff]   ;;  %vm1908_vm0 = vmmov 0   ;;  %v1909_v4 = vmov 1983009808  }
  0x17   : > { %1643 = vmatprep.subr.bf16.mxu0 %v1907_v2  ;;  %1651 = vmatprep.subr.bf16.mxu1 %v1907_v2  ;;  %v429_v5 = vunpack.c.l.s4 %v1909_v4  ;;  %s371_s15 = scalar_select %p370_p11, %s1897_s24, 1  ;;  %vm455_vm1 = vcmask 261120   ;;  %vm603_vm2 = vcmask 122880   ;;  %vm604_vm3 = vsmask.f32 256 }
  0x18   : > { %1644 = vmatpush3.bf16.msra.mxu0 %v1764_v0  ;;  %1647 = vmatprep.mubr.msk.bf16.mxu0 %vm1908_vm0, %v1907_v2  ;;  %v432_v6 = vshrl.u32 %v431_v1, 7  ;;  %vm624_vm4 = vcmask 124930   ;;  %vm625_vm5 = vsmask.f32 7946  ;;  %vm2039_vm6 = vmand %vm603_vm2, %vm604_vm3  ;;  %v606_v19 = vld [vmem:[#allocation2] sm:$0x1] }
  0x19   : > { %1645 = vmatprep.subr.bf16.mxu0 %v1907_v2  ;;  %1652 = vmatpush3.bf16.msra.mxu1 %v1764_v0  ;;  %v430_v7 = vunpack.c.0.s8 %v429_v5  ;;  %s2022_s16 = sshll.u32 %s371_s15, 3  ;;  %v627_v20 = vld [vmem:[#allocation2] sm:$0x4]  ;;  %v607_v21 = vsel %vm2039_vm6, 0, %v606_v19  ;;  %vm2045_vm7 = vmand %vm624_vm4, %vm625_vm5  ;;  %v1910_v24 = vmov 0.0|0.0   ;;  %vm664_vm8 = vcmask 124928  }
  0x1a   : > { %1653 = vmatprep.subr.bf16.mxu1 %v1907_v2  ;;  %1655 = vmatprep.mubr.msk.bf16.mxu1 %vm1908_vm0, %v1907_v2  ;;  %s377_s19 = scalar_lea.vmem %s2308_s0, %s2022_s16  ;;  %608 = vst [vmem:[#allocation2] sm:$0x1] %v607_v21  ;;  %v628_v23 = vsel %vm2045_vm7, 0, %v627_v20  ;;  %v1549_v25 = vcombine.low %v1910_v24, %v1910_v24  ;;  %v609_v29 = vld [vmem:[#allocation2 + $0x4] sm:$0x1]  ;;  %vm598_vm11 = vcmask 123904   ;;  %s390_s18 = scalar_lea.vmem %s2309_s1, %s2022_s16 }
  0x1b   : > { %v2028_v8 = vsub.s32 %v430_v7, %v432_v6  ;;  %v418_v9 = vld [vmem:[%s377_s19] sm:$0x3]  ;;  %v419_v10 = vld [vmem:[%s377_s19 + $0x2] sm:$0x3]  ;;  %v420_v11 = vld [vmem:[%s377_s19 + $0x4] sm:$0x3] }
  0x1c   : > { %1646 = vmatpush3.bf16.msra.mxu0 %v1765_v3  ;;  %v421_v12 = vld [vmem:[%s377_s19 + $0x6] sm:$0x3]  ;;  %v426_v13 = vcombine.low %v418_v9, %v419_v10  ;;  %629 = vst [vmem:[#allocation2] sm:$0x4] %v628_v23  ;;  %v657_v26 = vshrl.u32 %v1549_v25, 16  ;;  %v660_v28 = vshll.u32 %v1549_v25, 16 }
  0x1d   : > { %1659 = vmatprep.subr.bf16.mxu0 %v1907_v2  ;;  %1654 = vmatpush3.bf16.msra.mxu1 %v1765_v3  ;;  %v427_v14 = vcombine.low %v420_v11, %v421_v12  ;;  %v630_v30 = vld [vmem:[#allocation2 + $0x4] sm:$0x4]  ;;  %v610_v32 = vsel %vm2039_vm6, 0, %v609_v29  ;;  %vm665_vm9 = vsmask.f32 2306  ;;  %s1614_s11 = sadd.s32 6, %s2022_s16 }
  0x1e   : > { %1667 = vmatprep.subr.bf16.mxu1 %v1907_v2  ;;  %v434_v15 = vrot.slane %v426_v13, %v2028_v8  ;;  %v659_v27 = vrot.slane %v657_v26, 7  ;;  %v631_v33 = vsel %vm2045_vm7, 0, %v630_v30  ;;  %611 = vst [vmem:[#allocation2 + $0x4] sm:$0x1] %v610_v32  ;;  %v612_v34 = vld [vmem:[#allocation2 + $0x8] sm:$0x1]  ;;  %vm2055_vm10 = vmand %vm664_vm8, %vm665_vm9  ;;  %s406_s14 = scalar_lea.vmem %s2310_s2, %s1614_s11 }
  0x1f   : > { %v441_v16 = vrot.slane %v427_v14, %v2028_v8  ;;  %632 = vst [vmem:[#allocation2 + $0x4] sm:$0x4] %v631_v33  ;;  %v633_v35 = vld [vmem:[#allocation2 + $0x8] sm:$0x4]  ;;  %v613_v37 = vsel %vm2039_vm6, 0, %v612_v34  ;;  %vm826_vm12 = vcmask 130048  }
  0x20   : > { %v662_v31 = vor.u32 %v660_v28, %v659_v27  ;;  %v634_v38 = vsel %vm2045_vm7, 0, %v633_v35  ;;  %614 = vst [vmem:[#allocation2 + $0x8] sm:$0x1] %v613_v37  ;;  %v615_v41 = vld [vmem:[#allocation2 + $0xc] sm:$0x1]  ;;  %vm1003_vm13 = vcmask 392192  }
  0x21   : > { %v442_v17 = vcombine.low %v434_v15, %v441_v16  ;;  %635 = vst [vmem:[#allocation2 + $0x8] sm:$0x4] %v634_v38  ;;  %v636_v42 = vld [vmem:[#allocation2 + $0xc] sm:$0x4]  ;;  %v621_v43 = vld [vmem:[#allocation2 + $0x14] sm:$0x1] }
  0x22   : > { %v642_v44 = vld [vmem:[#allocation2 + $0x14] sm:$0x4]  ;;  %v616_v45 = vsel %vm2039_vm6, 0, %v615_v41  ;;  %v637_v46 = vsel %vm2045_vm7, 0, %v636_v42  ;;  %v622_v47 = vsel %vm2039_vm6, 0, %v621_v43  ;;  %s1363_s11 = sshll.u32 %s2087_s8, 4  ;;  %s2211_s11 = int_to_ptr.vmem [resolvable:$true] %s1363_s11 }
  0x23   : > { %1648 = vmatmul.mubr.msk.bf16.vlgmr.msra.gmra.mxu0 %vm455_vm1, %v442_v17  ;;  %v667_v39 = vld [vmem:[#allocation2] sm:$0x7]  ;;  %v643_v48 = vsel %vm2045_vm7, 0, %v642_v44  ;;  %617 = vst [vmem:[#allocation2 + $0xc] sm:$0x1] %v616_v45  ;;  %s1799_s19 = scalar_lea.vmem %s2211_s11, 128 }
  0x24   : > { %1660 = vmatpush3.bf16.msra.mxu0 %v1764_v0  ;;  %1663 = vmatprep.mubr.msk.bf16.mxu0 %vm1908_vm0, %v1907_v2  ;;  %v668_v40 = vsel %vm2055_vm10, %v662_v31, %v667_v39  ;;  %v618_v49 = vld [vmem:[#allocation2 + $0x10] sm:$0x1]  ;;  %638 = vst [vmem:[#allocation2 + $0xc] sm:$0x4] %v637_v46  ;;  %v639_v50 = vld [vmem:[#allocation2 + $0x10] sm:$0x4]  ;;  %p1800_p12 = scmp.ne.s32.totalorder %s2211_s11, %s1799_s19 }
  0x25   : > { %1661 = vmatprep.subr.bf16.mxu0 %v1907_v2  ;;  %669 = vst [vmem:[#allocation2] sm:$0x7] %v668_v40  ;;  %623 = vst [vmem:[#allocation2 + $0x14] sm:$0x1] %v622_v47  ;;  %v619_v51 = vsel %vm2039_vm6, 0, %v618_v49  ;;  %v640_v52 = vsel %vm2045_vm7, 0, %v639_v50 }
  0x26   : > { %644 = vst [vmem:[#allocation2 + $0x14] sm:$0x4] %v643_v48  ;;  %620 = vst [vmem:[#allocation2 + $0x10] sm:$0x1] %v619_v51  ;;  %v730_v11 = vld [vmem:[#allocation2 + $0x4] sm:$0x7]  ;;  %p1801_p13 = pnand %p1800_p12, %p1991_p4 }
  0x27   : > { %641 = vst [vmem:[#allocation2 + $0x10] sm:$0x4] %v640_v52 }
  0x28   : > { %1662 = vmatpush3.bf16.msra.mxu0 %v1765_v3  ;;  %v733_v18 = vld [vmem:[#allocation2 + $0x8] sm:$0x7]  ;;  %p1802_p0 = pneg %p1801_p13 }
  0x29   : > { %1677 = vmatprep.subr.bf16.mxu0 %v1907_v2 }
  0x2b   : > { %v736_v28 = vld [vmem:[#allocation2 + $0xc] sm:$0x7] }
  0x2c   : > { %v1766_v53 = vld [vmem:[#allocation2] ss:$0 sps:$4 sm:$0x66]  }
  0x2d   : > { %v814_v54 = vrot.slane %v1766_v53, 1  ;;  %v682_v55 = vld [vmem:[#allocation2 + $0x14] sm:$0x7]  ;;  %v1767_v56 = vld [vmem:[#allocation2] ss:$0 sps:$4 sm:$0x77]  }
  0x2e   : > { %v683_v57 = vsel %vm2055_vm10, %v662_v31, %v682_v55  ;;  %v767_v58 = vshrl.u32 %v1767_v56, 16  ;;  %v769_v59 = vshll.u32 %v1767_v56, 16  ;;  %v739_v30 = vld [vmem:[#allocation2 + $0x10] sm:$0x7] }
  0x2f   : > { %818 = vrot.lane.b32.xlu0 %v814_v54, %s2316_s20  ;;  %684 = vst [vmem:[#allocation2 + $0x14] sm:$0x7] %v683_v57 }
  0x30   : > { %v771_v60 = vrot.slane %v769_v59, 1 }
  0x32   : > { %v772_v61 = vor.u32 %v771_v60, %v767_v58 }
  0x34   : > { %794 = vrot.lane.b32.xlu0 %v772_v61, %s1912_s27 }
  0xe3   : > { %v493_v62 = vpop.f32.mrf.mxu0 }
  0xe4   : > { %v502_v63 = vcombine.high %v493_v62, %v493_v62  ;;  %v594_v0 = vpack.c.bf16 %v493_v62, %v493_v62 }
  0xe5   : > { %v1649_v1 = vpop.f32.mrf.mxu0 }
  0xe6   : > { %v595_v3 = vpack.c.bf16 %v502_v63, %v502_v63  ;;  %599 = vst.msk [vmem:[%s2087_s8] sm:$0x3] %vm598_vm11, %v594_v0  ;;  %v698_v4 = vshrl.u32 %v594_v0, 16  ;;  %v701_v7 = vshll.u32 %v594_v0, 16 }
  0xe7   : > { %v496_v5 = vpop.f32.mrf.mxu0 }
  0xe8   : > { %600 = vst.msk [vmem:[%s2087_s8 + $0x2] sm:$0x3] %vm598_vm11, %v595_v3  ;;  %v700_v6 = vrot.slane %v698_v4, 7  ;;  %v705_v9 = vshrl.u32 %v595_v3, 16  ;;  %v503_v10 = vcombine.high %v496_v5, %v496_v5  ;;  %v596_v12 = vpack.c.bf16 %v496_v5, %v496_v5 }
  0xe9   : > { %v1650_v13 = vpop.f32.mrf.mxu0  ;;  %v708_v16 = vshll.u32 %v595_v3, 16 }
  0xea   : > { %v703_v14 = vor.u32 %v701_v7, %v700_v6  ;;  %v707_v15 = vrot.slane %v705_v9, 7  ;;  %v597_v17 = vpack.c.bf16 %v503_v10, %v503_v10  ;;  %601 = vst.msk [vmem:[%s2087_s8 + $0x4] sm:$0x3] %vm598_vm11, %v596_v12  ;;  %v712_v19 = vshrl.u32 %v596_v12, 16 }
  0xeb   : > { %v715_v24 = vshll.u32 %v596_v12, 16 }
  0xec   : > { %v710_v20 = vor.u32 %v708_v16, %v707_v15  ;;  %v731_v21 = vsel %vm2055_vm10, %v703_v14, %v730_v11  ;;  %602 = vst.msk [vmem:[%s2087_s8 + $0x6] sm:$0x3] %vm598_vm11, %v597_v17  ;;  %v719_v22 = vshrl.u32 %v597_v17, 16  ;;  %v714_v23 = vrot.slane %v712_v19, 7  ;;  %s1803_s8 = sshll.u32 %s1913_s12, 4  ;;  %s1804_s8 = int_to_ptr.vmem [resolvable:$false] %s1803_s8 }
  0xed   : > { %732 = vst [vmem:[#allocation2 + $0x4] sm:$0x7] %v731_v21  ;;  %v722_v27 = vshll.u32 %v597_v17, 16  ;;  %s1805_s16 = scalar_lea.vmem %s1804_s8, 256  ;;  %p1806_p1 = scmp.lt.s32.totalorder %s2211_s11, %s1804_s8 }
  0xee   : > { %v734_v25 = vsel %vm2055_vm10, %v710_v20, %v733_v18  ;;  %v721_v26 = vrot.slane %v719_v22, 7  ;;  %v717_v29 = vor.u32 %v715_v24, %v714_v23  ;;  %v1787_v23 = vld [vmem:[#allocation2 + $0x14] ss:$0 sps:$4 sm:$0x77]   ;;  %p1807_p2 = scmp.lt.s32.totalorder %s1805_s16, %s1799_s19 }
  0xef   : > { %735 = vst [vmem:[#allocation2 + $0x8] sm:$0x7] %v734_v25 }
  0xf0   : > { %v724_v31 = vor.u32 %v722_v27, %v721_v26  ;;  %v737_v32 = vsel %vm2055_vm10, %v717_v29, %v736_v28  ;;  %v1790_v26 = vld [vmem:[%s2312_s4 + $0x10] sm:$0xff]   ;;  %v1792_v27 = vld [vmem:[%s2312_s4 + $0x28] sm:$0xff]   ;;  %p1808_p3 = por %p1807_p2, %p1806_p1 }
  0xf1   : > { %738 = vst [vmem:[#allocation2 + $0xc] sm:$0x7] %v737_v32  ;;  %v550_v32 = vld [vmem:[%s406_s14] sm:$0x3]  ;;  %s2318_s14 = sshll.u32 %s1897_s24, 7 }
  0xf2   : > { %v740_v33 = vsel %vm2055_vm10, %v724_v31, %v739_v30  ;;  %1664 = vmatmul.mubr.msk.bf16.vlgmr.msra.gmra.mxu0 %vm455_vm1, %v550_v32  ;;  %p1809_p5 = pnand %p1808_p3, %p1802_p0 }
  0xf3   : > { %741 = vst [vmem:[#allocation2 + $0x10] sm:$0x7] %v740_v33  ;;  %v506_v33 = vld [vmem:[%s390_s18] sm:$0x3]  ;;  %1678 = vmatpush3.bf16.msra.mxu0 %v1790_v26  ;;  %1683 = vmatprep.mubr.msk.bf16.mxu0 %vm1908_vm0, %v1907_v2  ;;  %s2219_s18 = scalar_lea.hbm %s2313_s5, %s2318_s14 }
  0xf4   : > { %v1768_v34 = vld [vmem:[#allocation2 + $0x4] ss:$0 sps:$4 sm:$0x66]   ;;  %1656 = vmatmul.mubr.msk.bf16.vlgmr.msra.gmra.mxu1 %vm455_vm1, %v506_v33  ;;  %1679 = vmatprep.subr.bf16.mxu0 %v1907_v2 }
  0xf5   : > { %v1769_v35 = vld [vmem:[#allocation2 + $0x4] ss:$0 sps:$4 sm:$0x66]   ;;  %v925_v37 = vrot.slane %v1768_v34, 1  ;;  %1668 = vmatpush3.bf16.msra.mxu1 %v1792_v27  ;;  %1673 = vmatprep.mubr.msk.bf16.mxu1 %vm1908_vm0, %v1907_v2 }
  0xf6   : > { %v1770_v38 = vld [vmem:[#allocation2 + $0x8] ss:$0 sps:$4 sm:$0x66]   ;;  %v815_v39 = vrot.slane %v1769_v35, 1  ;;  %v1180_v35 = vshll.u32 %v1787_v23, 16  ;;  %1669 = vmatprep.subr.bf16.mxu1 %v1907_v2 }
  0xf7   : > { %v1771_v40 = vld [vmem:[#allocation2 + $0x8] ss:$0 sps:$4 sm:$0x66]   ;;  %929 = vrot.lane.b32.xlu0 %v925_v37, %s2316_s20  ;;  %v1772_v41 = vld [vmem:[#allocation2 + $0x4] ss:$0 sps:$4 sm:$0x77]  }
  0xf8   : > { %820 = vrot.lane.b32.xlu1 %v815_v39, %s2316_s20  ;;  %v1773_v42 = vld [vmem:[#allocation2 + $0x4] ss:$0 sps:$4 sm:$0x77]   ;;  %v816_v43 = vrot.slane %v1771_v40, 1  ;;  %v776_v44 = vshll.u32 %v1772_v41, 16  ;;  %v926_v45 = vrot.slane %v1770_v38, 1 }
  0xf9   : > { %v880_v46 = vshll.u32 %v1773_v42, 16  ;;  %v1774_v47 = vld [vmem:[#allocation2 + $0xc] ss:$0 sps:$4 sm:$0x66]   ;;  %v774_v48 = vshrl.u32 %v1772_v41, 16  ;;  %v878_v49 = vshrl.u32 %v1773_v42, 16 }
  0xfa   : > { %v778_v36 = vrot.slane %v776_v44, 1  ;;  %v1776_v51 = vld [vmem:[#allocation2 + $0x8] ss:$0 sps:$4 sm:$0x77]   ;;  %v927_v59 = vrot.slane %v1774_v47, 1  ;;  %v1794_v38 = vld [vmem:[%s2312_s4 + $0x20] sm:$0xff]  }
  0xfb   : > { %822 = vrot.lane.b32.xlu0 %v816_v43, %s2316_s20  ;;  %v882_v50 = vrot.slane %v880_v46, 1  ;;  %v1775_v52 = vld [vmem:[#allocation2 + $0xc] ss:$0 sps:$4 sm:$0x66]   ;;  %v887_v55 = vshll.u32 %v1776_v51, 16  ;;  %v885_v3 = vshrl.u32 %v1776_v51, 16  ;;  %1670 = vmatpush3.bf16.msra.mxu1 %v1794_v38 }
  0xfc   : > { %931 = vrot.lane.b32.xlu1 %v926_v45, %s2316_s20  ;;  %v779_v53 = vor.u32 %v778_v36, %v774_v48  ;;  %v1777_v56 = vld [vmem:[#allocation2 + $0x10] ss:$0 sps:$4 sm:$0x66]   ;;  %v1778_v57 = vld [vmem:[#allocation2 + $0x8] ss:$0 sps:$4 sm:$0x77]   ;;  %1671 = vmatprep.subr.bf16.mxu1 %v1907_v2 }
  0xfd   : > { %v883_v54 = vor.u32 %v882_v50, %v878_v49  ;;  %v1779_v58 = vld [vmem:[#allocation2 + $0xc] ss:$0 sps:$4 sm:$0x77]   ;;  %v783_v60 = vshll.u32 %v1778_v57, 16  ;;  %v817_v62 = vrot.slane %v1775_v52, 1  ;;  %v889_v63 = vrot.slane %v887_v55, 1 }
  0xfe   : > { %v1780_v61 = vld [vmem:[#allocation2 + $0x8] ss:$0 sps:$4 sm:$0x77]   ;;  %v894_v0 = vshll.u32 %v1779_v58, 16  ;;  %v928_v4 = vrot.slane %v1777_v56, 1  ;;  %v781_v12 = vshrl.u32 %v1778_v57, 16  ;;  %v819_v57 = vpop.permute.xlu0 %818 }
  0xff   : > { %905 = vrot.lane.b32.xlu0 %v883_v54, %s1912_s27  ;;  %v1781_v1 = vld [vmem:[#allocation2 + $0xc] ss:$0 sps:$4 sm:$0x77]   ;;  %v785_v5 = vrot.slane %v783_v60, 1  ;;  %v1159_v6 = vshll.u32 %v1780_v61, 16  ;;  %v890_v9 = vor.u32 %v889_v63, %v885_v3  ;;  %v892_v13 = vshrl.u32 %v1779_v58, 16 }
 0x100   : > { %796 = vrot.lane.b32.xlu1 %v779_v53, %s1912_s27  ;;  %v1783_v7 = vld [vmem:[#allocation2 + $0xc] ss:$0 sps:$4 sm:$0x77]   ;;  %v896_v10 = vrot.slane %v894_v0, 1  ;;  %v790_v11 = vshll.u32 %v1781_v1, 16  ;;  %v1157_v21 = vshrl.u32 %v1780_v61, 16 }
 0x101   : > { %v1161_v14 = vrot.slane %v1159_v6, 1  ;;  %v1166_v15 = vshll.u32 %v1783_v7, 16  ;;  %v1784_v16 = vld [vmem:[#allocation2 + $0x10] ss:$0 sps:$4 sm:$0x77]   ;;  %v786_v17 = vor.u32 %v785_v5, %v781_v12  ;;  %v788_v22 = vshrl.u32 %v1781_v1, 16 }
 0x102   : > { %v897_v18 = vor.u32 %v896_v10, %v892_v13  ;;  %v792_v19 = vrot.slane %v790_v11, 1  ;;  %v1785_v20 = vld [vmem:[#allocation2 + $0x10] ss:$0 sps:$4 sm:$0x77]   ;;  %v1173_v30 = vshll.u32 %v1784_v16, 16  ;;  %v1164_v34 = vshrl.u32 %v1783_v7, 16  ;;  %v795_v58 = vpop.permute.xlu0 %794 }
 0x103   : > { %933 = vrot.lane.b32.xlu0 %v927_v59, %s2316_s20  ;;  %v1782_v24 = vld [vmem:[#allocation2 + $0x8] ss:$0 sps:$4 sm:$0x66]   ;;  %v1168_v25 = vrot.slane %v1166_v15, 1  ;;  %v1162_v28 = vor.u32 %v1161_v14, %v1157_v21  ;;  %v901_v31 = vshll.u32 %v1785_v20, 16  ;;  %v1171_v43 = vshrl.u32 %v1784_v16, 16 }
 0x104   : > { %824 = vrot.lane.b32.xlu1 %v817_v62, %s2316_s20  ;;  %v793_v29 = vor.u32 %v792_v19, %v788_v22  ;;  %v1791_v37 = vld [vmem:[%s2312_s4 + $0x8] sm:$0xff]   ;;  %v1204_v39 = vrot.slane %v1782_v24, 1  ;;  %v1175_v41 = vrot.slane %v1173_v30, 1  ;;  %v899_v44 = vshrl.u32 %v1785_v20, 16  ;;  %v1793_v36 = vld [vmem:[%s2312_s4] sm:$0xff]   ;;  %v1795_v47 = vld [vmem:[%s2312_s4 + $0x18] sm:$0xff]  }
 0x105   : > { %v1169_v40 = vor.u32 %v1168_v25, %v1164_v34  ;;  %v903_v42 = vrot.slane %v901_v31, 1  ;;  %v1178_v45 = vshrl.u32 %v1787_v23, 16  ;;  %v1182_v46 = vrot.slane %v1180_v35, 1  ;;  %1680 = vmatpush3.bf16.msra.mxu0 %v1791_v37  ;;  %v1786_v50 = vld [vmem:[#allocation2 + $0x10] ss:$0 sps:$4 sm:$0x66]   ;;  %1672 = vmatpush3.bf16.msra.mxu1 %v1795_v47 }
 0x106   : > { %v1176_v48 = vor.u32 %v1175_v41, %v1171_v43  ;;  %1681 = vmatprep.subr.bf16.mxu0 %v1907_v2  ;;  %v1206_v52 = vrot.slane %v1786_v50, 1  ;;  %v1788_v53 = vld [vmem:[#allocation2 + $0xc] ss:$0 sps:$4 sm:$0x66]   ;;  %1687 = vmatprep.subr.bf16.mxu1 %v1907_v2  ;;  %v742_v6 = vld [vmem:[#allocation2] sm:$0x3] }
 0x107   : > { %907 = vrot.lane.b32.xlu0 %v890_v9, %s1912_s27  ;;  %v904_v49 = vor.u32 %v903_v42, %v899_v44  ;;  %v1183_v51 = vor.u32 %v1182_v46, %v1178_v45  ;;  %v1789_v54 = vld [vmem:[#allocation2 + $0x14] ss:$0 sps:$4 sm:$0x66]   ;;  %v1205_v55 = vrot.slane %v1788_v53, 1  ;;  %v743_v7 = vld [vmem:[#allocation2 + $0x4] sm:$0x3]  ;;  %v829_v12 = vsel %vm826_vm12, %v742_v6, %v795_v58 }
 0x108   : > { %935 = vrot.lane.b32.xlu1 %v928_v4, %s2316_s20  ;;  %v1207_v56 = vrot.slane %v1789_v54, 1  ;;  %v744_v14 = vld [vmem:[#allocation2 + $0x8] sm:$0x3]  ;;  %v840_v16 = vsel %vm455_vm1, %v829_v12, %v819_v57  ;;  %v853_v27 = vld [vmem:[#allocation2 + $0x4] sm:$0x3]  ;;  %v1798_v6 = vld [vmem:[%s2312_s4 + $0x30] sm:$0xff]  }
 0x109   : > { %1682 = vmatpush3.bf16.msra.mxu0 %v1793_v36  ;;  %v854_v22 = vld [vmem:[#allocation2 + $0x8] sm:$0x3]  ;;  %v855_v33 = vld [vmem:[#allocation2 + $0xc] sm:$0x3] }
 0x10a   : > { %v1133_v50 = vld [vmem:[#allocation2 + $0xc] sm:$0x3]  ;;  %v1132_v54 = vld [vmem:[#allocation2 + $0x8] sm:$0x3] }
 0x10b   : > { %798 = vrot.lane.b32.xlu0 %v786_v17, %s1912_s27 }
 0x10c   : > { %909 = vrot.lane.b32.xlu1 %v897_v18, %s1912_s27  ;;  %v745_v18 = vld [vmem:[#allocation2 + $0xc] sm:$0x3] }
 0x10f   : > { %1184 = vrot.lane.b32.xlu0 %v1162_v28, %s1912_s27 }
 0x110   : > { %800 = vrot.lane.b32.xlu1 %v793_v29, %s1912_s27 }
 0x113   : > { %1208 = vrot.lane.b32.xlu0 %v1204_v39, %s2327_s13 }
 0x114   : > { %1186 = vrot.lane.b32.xlu1 %v1169_v40, %s1912_s27  ;;  %v856_v40 = vld [vmem:[#allocation2 + $0x10] sm:$0x3] }
 0x117   : > { %1188 = vrot.lane.b32.xlu0 %v1176_v48, %s1912_s27 }
 0x118   : > { %911 = vrot.lane.b32.xlu1 %v904_v49, %s1912_s27  ;;  %v1796_v49 = vld [vmem:[%s2312_s4 + $0x40] sm:$0xff]  }
 0x11b   : > { %1212 = vrot.lane.b32.xlu0 %v1206_v52, %s2327_s13 }
 0x11c   : > { %1190 = vrot.lane.b32.xlu1 %v1183_v51, %s1912_s27  ;;  %s1343_s27 = scalar_lea.sflag [#allocation4], %s2082_s28 }
 0x120   : > { %1210 = vrot.lane.b32.xlu1 %v1205_v55, %s2327_s13  ;;  %v1135_v55 = vld [vmem:[#allocation2 + $0x14] sm:$0x3] }
 0x124   : > { %1214 = vrot.lane.b32.xlu1 %v1207_v56, %s2327_s13 }
 0x169   : > { %v930_v59 = vpop.permute.xlu0 %929 }
 0x16a   : > { %v821_v60 = vpop.permute.xlu1 %820 }
 0x16d   : > { %v823_v61 = vpop.permute.xlu0 %822 }
 0x16e   : > { %v932_v62 = vpop.permute.xlu1 %931 }
 0x171   : > { %v906_v0 = vpop.permute.xlu0 %905 }
 0x172   : > { %v797_v63 = vpop.permute.xlu1 %796  ;;  %v939_v30 = vsel %vm826_vm12, %v853_v27, %v906_v0 }
 0x173   : > { %v832_v9 = vsel %vm826_vm12, %v743_v7, %v797_v63  ;;  %v950_v38 = vsel %vm455_vm1, %v939_v30, %v930_v59  ;;  %v1797_v59 = vld [vmem:[%s2312_s4 + $0x38] sm:$0xff]  }
 0x174   : > { %v842_v13 = vsel %vm455_vm1, %v832_v9, %v821_v60 }
 0x175   : > { %v934_v1 = vpop.permute.xlu0 %933  ;;  %v1052_v20 = vcombine.low %v840_v16, %v842_v13 }
 0x176   : > { %v825_v3 = vpop.permute.xlu1 %824 }
 0x177   : > { %v1060_v29 = vrot.slane %v1052_v20, %v2028_v8 }
 0x179   : > { %v908_v4 = vpop.permute.xlu0 %907 }
 0x17a   : > { %v936_v5 = vpop.permute.xlu1 %935  ;;  %v942_v25 = vsel %vm826_vm12, %v854_v22, %v908_v4 }
 0x17b   : > { %v952_v32 = vsel %vm455_vm1, %v942_v25, %v932_v62 }
 0x17c   : > { %v968_v41 = vcombine.low %v950_v38, %v952_v32 }
 0x17d   : > { %v799_v10 = vpop.permute.xlu0 %798 }
 0x17e   : > { %v910_v11 = vpop.permute.xlu1 %909  ;;  %v835_v15 = vsel %vm826_vm12, %v744_v14, %v799_v10  ;;  %v976_v47 = vrot.slane %v968_v41, %v2028_v8 }
 0x17f   : > { %v844_v23 = vsel %vm455_vm1, %v835_v15, %v823_v61  ;;  %v945_v35 = vsel %vm826_vm12, %v855_v33, %v910_v11  ;;  %v1134_v61 = vld [vmem:[#allocation2 + $0x10] sm:$0x3] }
 0x180   : > { %v954_v43 = vsel %vm455_vm1, %v945_v35, %v934_v1 }
 0x181   : > { %v1185_v17 = vpop.permute.xlu0 %1184 }
 0x182   : > { %v801_v19 = vpop.permute.xlu1 %800  ;;  %v1218_v57 = vsel %vm826_vm12, %v1132_v54, %v1185_v17 }
 0x183   : > { %v838_v21 = vsel %vm826_vm12, %v745_v18, %v801_v19 }
 0x184   : > { %v846_v24 = vsel %vm455_vm1, %v838_v21, %v825_v3 }
 0x185   : > { %v1053_v26 = vcombine.low %v844_v23, %v846_v24  ;;  %v1209_v34 = vpop.permute.xlu0 %1208 }
 0x186   : > { %v1187_v28 = vpop.permute.xlu1 %1186  ;;  %v1229_v60 = vsel %vm455_vm1, %v1218_v57, %v1209_v34 }
 0x187   : > { %v1067_v31 = vrot.slane %v1053_v26, %v2028_v8  ;;  %v1221_v52 = vsel %vm826_vm12, %v1133_v50, %v1187_v28 }
 0x189   : > { %v1068_v37 = vcombine.low %v1060_v29, %v1067_v31  ;;  %v1189_v46 = vpop.permute.xlu0 %1188 }
 0x18a   : > { %v912_v39 = vpop.permute.xlu1 %911  ;;  %v1224_v62 = vsel %vm826_vm12, %v1134_v61, %v1189_v46 }
 0x18b   : > { %v948_v42 = vsel %vm826_vm12, %v856_v40, %v912_v39  ;;  %1684 = vmatmul.mubr.msk.bf16.vlgmr.msra.gmra.mxu0 %vm1003_vm13, %v1068_v37 }
 0x18c   : > { %v956_v44 = vsel %vm455_vm1, %v948_v42, %v936_v5 }
 0x18d   : > { %v969_v45 = vcombine.low %v954_v43, %v956_v44  ;;  %v1213_v58 = vpop.permute.xlu0 %1212 }
 0x18e   : > { %v1191_v36 = vpop.permute.xlu1 %1190  ;;  %v1233_v3 = vsel %vm455_vm1, %v1224_v62, %v1213_v58 }
 0x18f   : > { %v983_v48 = vrot.slane %v969_v45, %v2028_v8  ;;  %v1227_v63 = vsel %vm826_vm12, %v1135_v55, %v1191_v36 }
 0x191   : > { %v984_v51 = vcombine.low %v976_v47, %v983_v48 }
 0x192   : > { %v1211_v53 = vpop.permute.xlu1 %1210 }
 0x193   : > { %v1231_v56 = vsel %vm455_vm1, %v1221_v52, %v1211_v53  ;;  %1674 = vmatmul.mubr.msk.bf16.vlgmr.msra.gmra.mxu1 %vm1003_vm13, %v984_v51 }
 0x194   : > { %1688 = vmatpush3.bf16.msra.mxu1 %v1796_v49  ;;  %1693 = vmatprep.mubr.msk.bf16.mxu1 %vm1908_vm0, %v1907_v2  ;;  %v1247_v0 = vcombine.low %v1229_v60, %v1231_v56 }
 0x195   : > { %1689 = vmatprep.subr.bf16.mxu1 %v1907_v2 }
 0x196   : > { %v1215_v1 = vpop.permute.xlu1 %1214  ;;  %v1255_v7 = vrot.slane %v1247_v0, %v2028_v8 }
 0x197   : > { %v1235_v4 = vsel %vm455_vm1, %v1227_v63, %v1215_v1 }
 0x198   : > { %v1248_v5 = vcombine.low %v1233_v3, %v1235_v4  ;;  %1690 = vmatpush3.bf16.msra.mxu1 %v1797_v59 }
 0x199   : > { %1691 = vmatprep.subr.bf16.mxu1 %v1907_v2 }
 0x19a   : > { %v1262_v9 = vrot.slane %v1248_v5, %v2028_v8 }
 0x19c   : > { %v1263_v10 = vcombine.low %v1255_v7, %v1262_v9  ;;  %1692 = vmatpush3.bf16.msra.mxu1 %v1798_v6 }
 0x19f   : > { %1694 = vmatmul.mubr.msk.bf16.vlgmr.msra.gmra.mxu1 %vm1003_vm13, %v1263_v10 }
 0x1b2   : > { %v588_v12 = vpop.f32.mrf.mxu0 }
 0x1b4   : > { %v544_v11 = vpop.f32.mrf.mxu1  ;;  %v1665_v14 = vpop.f32.mrf.mxu0 }
 0x1b6   : > { %v1657_v13 = vpop.f32.mrf.mxu1  ;;  %v591_v16 = vpop.f32.mrf.mxu0 }
 0x1b8   : > { %v547_v15 = vpop.f32.mrf.mxu1  ;;  %v1666_v2 = vpop.f32.mrf.mxu0 }
 0x1ba   : > { %v1658_v17 = vpop.f32.mrf.mxu1 }
 0x1bb   : > { %1812 = shalt.err (!%p1809_p5)
}
 0x1bc   : > { %s1813_s20 = scalar_lea.hbm %s2219_s18, 128  ;;  %s1817_s17 = scalar_lea.hbm %s2313_s5, 256 }
 0x1bd   : > { %p1814_p6 = scmp.ne.s32.totalorder %s2219_s18, %s1813_s20  ;;  %p1818_p10 = scmp.lt.s32.totalorder %s2219_s18, %s2313_s5 }
 0x1be   : > { %p1819_p11 = scmp.lt.s32.totalorder %s1817_s17, %s1813_s20 }
 0x1bf   : > { %p1815_p7 = pnand %p1814_p6, %p1991_p4 }
 0x1c0   : > { %p1820_p12 = por %p1819_p11, %p1818_p10 }
 0x1c1   : > { %p1816_p9 = pneg %p1815_p7 }
 0x1c3   : > { %p1821_p13 = pnand %p1820_p12, %p1816_p9 }
 0x1c5   : > { %1824 = shalt.err (!%p1821_p13)
}
 0x1c6   : > { %s1914_s19 = smov 2   ;;  %s1348_s30 = scalar_lea.sflag [#allocation6], %s2082_s28 }
 0x1c7   : > { %1697 = dma.vmem_to_hbm [thread:$0]  (%p1991_p4), %s2211_s11, 128, %s2219_s18, %s1343_s27, %s2327_s13, %s2327_s13, %s1914_s19  }
 0x1c8   : > { %s2328_s11 = sshll.u32 %s2082_s28, 3  ;;  %s2329_s27 = sshll.u32 %s1897_s24, 7 }
 0x1c9   : > { %s368_s14 = scalar_lea.vmem [#allocation5], %s2328_s11  ;;  %s2257_s20 = scalar_lea.hbm %s2314_s6, %s2329_s27 }
 0x1ca   : > { %s1381_s18 = sshll.u32 %s368_s14, 4  ;;  %s1915_s17 = smov [#allocation5]   ;;  %s2259_s18 = int_to_ptr.vmem [resolvable:$true] %s1381_s18 }
 0x1cb   : > { %s1825_s15 = scalar_lea.vmem %s2259_s18, 128  ;;  %s1829_s24 = sshll.u32 %s1915_s17, 4  ;;  %s1830_s24 = int_to_ptr.vmem [resolvable:$false] %s1829_s24 }
 0x1cc   : > { %p1826_p0 = scmp.ne.s32.totalorder %s2259_s18, %s1825_s15  ;;  %s1831_s12 = scalar_lea.vmem %s1830_s24, 256 }
 0x1cd   : > { %p1832_p3 = scmp.lt.s32.totalorder %s2259_s18, %s1830_s24  ;;  %p1833_p5 = scmp.lt.s32.totalorder %s1831_s12, %s1825_s15 }
 0x1ce   : > { %p1827_p1 = pnand %p1826_p0, %p1991_p4 }
 0x1cf   : > { %p1834_p6 = por %p1833_p5, %p1832_p3 }
 0x1d0   : > { %p1828_p2 = pneg %p1827_p1 }
 0x1d2   : > { %p1835_p7 = pnand %p1834_p6, %p1828_p2 }
 0x24b   : > { %v1124_v8 = vpop.f32.mrf.mxu0 }
 0x24d   : > { %v1685_v18 = vpop.f32.mrf.mxu0 }
 0x24f   : > { %v1127_v19 = vpop.f32.mrf.mxu0 }
 0x251   : > { %v1686_v20 = vpop.f32.mrf.mxu0 }
 0x253   : > { %v1041_v21 = vpop.f32.mrf.mxu1 }
 0x254   : > { %v1125_v25 = vadd.f32 %v1124_v8, %v1041_v21 }
 0x255   : > { %v1675_v22 = vpop.f32.mrf.mxu1 }
 0x257   : > { %v1044_v23 = vpop.f32.mrf.mxu1 }
 0x258   : > { %v1128_v29 = vadd.f32 %v1127_v19, %v1044_v23 }
 0x259   : > { %v1676_v24 = vpop.f32.mrf.mxu1 }
 0x25f   : > { %v1319_v26 = vpop.f32.mrf.mxu1 }
 0x260   : > { %v1326_v27 = vadd.f32 %v1319_v26, %v1125_v25 }
 0x261   : > { %v1695_v28 = vpop.f32.mrf.mxu1 }
 0x262   : > { %v1330_v30 = vcombine.high %v1326_v27, %v1326_v27  ;;  %v1334_v31 = vpack.c.bf16 %v1326_v27, %v1326_v27 }
 0x263   : > { %v1322_v32 = vpop.f32.mrf.mxu1 }
 0x264   : > { %v1335_v33 = vpack.c.bf16 %v1330_v30, %v1330_v30  ;;  %1338 = vst.msk [vmem:[%s368_s14] sm:$0x3] %vm598_vm11, %v1334_v31  ;;  %v1327_v34 = vadd.f32 %v1322_v32, %v1128_v29 }
 0x265   : > { %v1696_v35 = vpop.f32.mrf.mxu1 }
 0x266   : > { %1339 = vst.msk [vmem:[%s368_s14 + $0x2] sm:$0x3] %vm598_vm11, %v1335_v33  ;;  %v1331_v37 = vcombine.high %v1327_v34, %v1327_v34  ;;  %v1336_v38 = vpack.c.bf16 %v1327_v34, %v1327_v34 }
 0x268   : > { %v1337_v39 = vpack.c.bf16 %v1331_v37, %v1331_v37  ;;  %1340 = vst.msk [vmem:[%s368_s14 + $0x4] sm:$0x3] %vm598_vm11, %v1336_v38 }
 0x26a   : > { %1341 = vst.msk [vmem:[%s368_s14 + $0x6] sm:$0x3] %vm598_vm11, %v1337_v39 }
 0x26b   : > { %1838 = shalt.err (!%p1835_p7)
}
 0x26c   : > { %s1839_s11 = scalar_lea.hbm %s2257_s20, 128  ;;  %s1843_s27 = scalar_lea.hbm %s2314_s6, 256 }
 0x26d   : > { %p1840_p9 = scmp.ne.s32.totalorder %s2257_s20, %s1839_s11  ;;  %p1844_p12 = scmp.lt.s32.totalorder %s2257_s20, %s2314_s6 }
 0x26e   : > { %p1845_p13 = scmp.lt.s32.totalorder %s1843_s27, %s1839_s11 }
 0x26f   : > { %p1841_p10 = pnand %p1840_p9, %p1991_p4 }
 0x270   : > { %p1846_p0 = por %p1845_p13, %p1844_p12 }
 0x271   : > { %p1842_p11 = pneg %p1841_p10 }
 0x273   : > { %p1847_p1 = pnand %p1846_p0, %p1842_p11 }
 0x275   : > { %1850 = shalt.err (!%p1847_p1)
}
 0x276   : > { %1698 = dma.vmem_to_hbm [thread:$0]  (%p1991_p4), %s2259_s18, 128, %s2257_s20, %s1348_s30, %s2327_s13, %s2327_s13, %s1914_s19  }
 0x277 PF: > { %p1708_p2 = scmp.ge.s32.totalorder %s1905_s26, 2  ;;  %s1396_s15 = sand.u32 1, %s1885_s21  }
 0x278   : > { %s1397_s17 = scalar_lea.sflag [#allocation4], %s1396_s15 }
 0x279   : > { %p1702_p3 = pnand %p1708_p2, %p1998_p8 }
 0x27b   : > { %p1703_p5 = pneg %p1702_p3 }
 0x27d   : > { %1876 = dma.done.wait (%p1703_p5), %s1397_s17, 128  }
 0x27e   : > { %1878 = vsyncadd (%p1703_p5), %s1397_s17, 4294967168  ;;  %s1406_s24 = scalar_lea.sflag [#allocation6], %s1396_s15 }
 0x27f   : > { %1880 = dma.done.wait (%p1703_p5), %s1406_s24, 128  }
 0x280   : > { %1882 = vsyncadd (%p1703_p5), %s1406_s24, 4294967168  ;;  %s23_s26 = sadd.s32 1, %s1905_s26   ;;  %s2330_s21 = smov %s1889_s22 }
 0x281   : > { %p20_p6 = scmp.ge.s32.totalorder %s23_s26, 4   ;;  %s2331_s22 = smov %s1893_s23 }
 0x282   : > { %s2332_s23 = smov %s2004_s10  ;;  %s2333_s24 = smov %s1901_s25 }
 0x283   : > { %s2334_s25 = smov %s2336_s29  ;;  %22 = sbr.rel (!%p20_p6) target bundleno = 6 (0x6), region = 103 }
 0x288   :  { %1411 = vsyncpa [#allocation4], 1 }
 0x289   :  { %1413 = vsyncpa [#allocation4 + $0x1], 1 }
 0x28a   :  { %1414 = vsyncpa [#allocation6], 1 }
 0x28b   :  { %1416 = vsyncpa [#allocation6 + $0x1], 1 }

</bundles_post_ra>
